<compile_context>
chip_gen: v5e
topology: v5e:2x2
jax: 0.10.0
libtpu: 0.0.40
codegen_flags: <defaults>
</compile_context>

<pallas_src>
import math

import jax
import jax.numpy as jnp
from jax.experimental import pallas as pl
from jax.experimental.pallas import tpu as pltpu


def _round_up(v, m):
    return ((v + m - 1) // m) * m


def _vmem_budget_bytes():
    """Generation-aware VMEM budget (leaves headroom for Mosaic scratch)."""
    cap = 64 * 1024 * 1024  # conservative default (v7x physical VMEM per TC)
    try:
        info = pltpu.get_tpu_info()
        cap = int(getattr(info, "vmem_capacity_bytes", cap))
    except Exception:
        pass
    return max(32 * 1024 * 1024, min((cap * 3) // 4, 112 * 1024 * 1024))


# ----------------------------------------------------------------------------
# Kernels
# ----------------------------------------------------------------------------
def _gating_kernel_resident(x_ref, w_ref, b_ref, o_ref):
    # x_ref : (tb, Dp) input rows (read from HBM exactly once)
    # w_ref : (Dp, Dp) full gating weight, resident across all batch tiles
    # b_ref : (1,  Dp) f32 bias
    # o_ref : (tb, Dp) output row slab
    x = x_ref[...]
    x_mm = x if x.dtype == w_ref.dtype else x.astype(w_ref.dtype)
    gates = jnp.dot(x_mm, w_ref[...], preferred_element_type=jnp.float32)
    gates = jax.nn.sigmoid(gates + b_ref[...])
    o_ref[...] = (x.astype(jnp.float32) * gates).astype(o_ref.dtype)


def _make_slab_kernel(tn, has_gate_input):
    """Column-slab kernel. Gate operand either sliced from x_ref or passed
    separately (bf16 matmul path keeps an original-dtype x column slice)."""
    if has_gate_input:

        def kernel(x_ref, w_ref, b_ref, xc_ref, o_ref):
            # x_ref : (tb, Dp) matmul operand (weight dtype, pre-cast on host)
            # w_ref : (Dp, tn) weight column slab (resident over batch axis)
            # b_ref : (1,  tn) f32 bias slab
            # xc_ref: (tb, tn) original-dtype x column slice (gate multiply)
            gates = jnp.dot(x_ref[...], w_ref[...],
                            preferred_element_type=jnp.float32)
            gates = jax.nn.sigmoid(gates + b_ref[...])
            o_ref[...] = (xc_ref[...].astype(jnp.float32) * gates).astype(o_ref.dtype)

    else:

        def kernel(x_ref, w_ref, b_ref, o_ref):
            # Slice the gate-multiply operand out of the already-resident x
            # block: 128-aligned lane slice in VMEM, no extra HBM traffic.
            j = pl.program_id(0)
            start = pl.multiple_of(j * tn, 128)
            xc = x_ref[:, pl.ds(start, tn)]
            gates = jnp.dot(x_ref[...], w_ref[...],
                            preferred_element_type=jnp.float32)
            gates = jax.nn.sigmoid(gates + b_ref[...])
            o_ref[...] = (xc.astype(jnp.float32) * gates).astype(o_ref.dtype)

    return kernel


# ----------------------------------------------------------------------------
# Wrapper
# ----------------------------------------------------------------------------
def gating_context(x, gating_weights, gating_biases, *, tb=None, tn=None,
                   weights_in_bf16=False, resident_w=None):
    """Pallas implementation of GatingContext.forward (no batch norm).

    weights_in_bf16: run the matmul with bf16 operands (recommended on all TPU
        generations: halves W / x HBM traffic and uses the MXU's native input
        type); accumulation, bias, sigmoid and the final x * gates multiply
        stay f32 / original dtype.  Default False == exact f32 reference.
    resident_w: force (True/False) the fully-resident-W fast path; None picks
        automatically from the generation-aware VMEM budget.
    """
    B, D = x.shape
    assert gating_weights.shape == (D, D)
    assert gating_biases.shape == (D,)

    out_dtype = x.dtype
    x_itemsize = jnp.dtype(x.dtype).itemsize

    # Lane-dense feature dim (multiple of 128) -> unmasked vector stores.
    Dp = max(_round_up(D, 128), 128)

    # ---- parameter prep (pad / cast on the host/XLA side) -------------------
    w_p = gating_weights
    b_p = gating_biases.astype(jnp.float32)
    if Dp != D:
        w_p = jnp.pad(w_p, ((0, Dp - D), (0, Dp - D)))
        b_p = jnp.pad(b_p, (0, Dp - D))
    if weights_in_bf16:
        w_p = w_p.astype(jnp.bfloat16)
    w_itemsize = jnp.dtype(w_p.dtype).itemsize
    bias2d = b_p.reshape(1, Dp)

    # ---- batch tile (sublane packing of the narrowest blocked operand) ------
    pack = max(8, 32 // min(x_itemsize, w_itemsize))
    if tb is None:
        n_row_tiles = -(-B // 256)                   # target <= 256-row tiles
        tb_sel = _round_up(-(-B // n_row_tiles), pack)
    else:
        tb_sel = _round_up(tb, pack)
    tb_sel = min(tb_sel, _round_up(B, pack))
    Bp = _round_up(B, tb_sel)

    x_p = x
    if (Bp, Dp) != (B, D):
        x_p = jnp.pad(x, ((0, Bp - B), (0, Dp - D)))

    budget = _vmem_budget_bytes()

    # ---- path A: fully-resident W (x streamed exactly once) ----------------
    foot_a = (2 * Dp * Dp * w_itemsize            # W (counted double-buffered)
              + 2 * tb_sel * Dp * x_itemsize      # x in
              + 2 * tb_sel * Dp * x_itemsize      # out
              + 2 * Dp * 4                        # bias
              + 2 * tb_sel * Dp * 4)              # f32 gates / cast temporaries
    use_resident = (foot_a <= budget) if resident_w is None else bool(resident_w)

    if use_resident:
        cost = pl.CostEstimate(
            flops=int(2 * Bp * Dp * Dp),
            transcendentals=int(Bp * Dp),
            bytes_accessed=int(Bp * Dp * x_itemsize        # x read once
                               + Dp * Dp * w_itemsize      # W read once
                               + Dp * 4                    # bias
                               + Bp * Dp * x_itemsize),    # output
        )
        out = pl.pallas_call(
            _gating_kernel_resident,
            out_shape=jax.ShapeDtypeStruct((Bp, Dp), out_dtype),
            grid_spec=pltpu.PrefetchScalarGridSpec(
                num_scalar_prefetch=0,
                grid=(Bp // tb_sel,),
                in_specs=[
                    pl.BlockSpec((tb_sel, Dp), lambda i: (i, 0)),  # x rows
                    pl.BlockSpec((Dp, Dp), lambda i: (0, 0)),      # full W
                    pl.BlockSpec((1, Dp), lambda i: (0, 0)),       # bias
                ],
                out_specs=pl.BlockSpec((tb_sel, Dp), lambda i: (i, 0)),
            ),
            compiler_params=pltpu.CompilerParams(
                dimension_semantics=("parallel",),
                vmem_limit_bytes=int(budget),
            ),
            cost_estimate=cost,
        )(x_p, w_p, bias2d)

    # ---- path B: column-slab (W never fully resident) -----------------------
    else:
        # Pre-cast the streamed matmul operand to the weight dtype on the host
        # (it is re-read Dp/tn times; bf16 halves that dominant HBM term and
        # removes the per-step VPU cast).  Original-dtype x is only needed for
        # the small (tb, tn) gate-multiply slice.
        cast_x = weights_in_bf16 and (x_p.dtype != w_p.dtype)
        x_mm = x_p.astype(w_p.dtype) if cast_x else x_p
        mm_itemsize = jnp.dtype(x_mm.dtype).itemsize

        if tn is not None:
            tn_sel = tn
            assert tn_sel % 128 == 0 and Dp % tn_sel == 0
        else:
            tn_sel = None
            for cand in (1024, 768, 512, 384, 256, 128):
                if cand > Dp or Dp % cand != 0:
                    continue
                foot_b = (2 * tb_sel * Dp * mm_itemsize      # x matmul block
                          + 2 * Dp * cand * w_itemsize       # W slab
                          + 2 * cand * 4                     # bias slab
                          + 2 * tb_sel * cand * x_itemsize   # output slab
                          + (2 * tb_sel * cand * x_itemsize if cast_x else 0)
                          + tb_sel * cand * 4)               # f32 gates temp
                if foot_b <= budget:
                    tn_sel = cand
                    break
            if tn_sel is None:
                # TODO(synk): K-tiled fallback for very large D; smallest slab
                # is the best we can do with the full-K design.
                tn_sel = 128

        kernel = _make_slab_kernel(tn_sel, cast_x)
        in_specs = [
            pl.BlockSpec((tb_sel, Dp), lambda j, i: (i, 0)),     # x (matmul)
            pl.BlockSpec((Dp, tn_sel), lambda j, i: (0, j)),     # W slab
            pl.BlockSpec((1, tn_sel), lambda j, i: (0, j)),      # bias slab
        ]
        args = [x_mm, w_p, bias2d]
        if cast_x:
            in_specs.append(pl.BlockSpec((tb_sel, tn_sel), lambda j, i: (i, j)))
            args.append(x_p)                                     # gate operand

        cost = pl.CostEstimate(
            flops=int(2 * Bp * Dp * Dp),
            transcendentals=int(Bp * Dp),
            bytes_accessed=int(
                Bp * Dp * mm_itemsize * (Dp // tn_sel)   # x re-streamed per slab
                + (Bp * Dp * x_itemsize if cast_x else 0)
                + Dp * Dp * w_itemsize                   # W read once
                + Dp * 4
                + Bp * Dp * x_itemsize),                 # output
        )
        out = pl.pallas_call(
            kernel,
            out_shape=jax.ShapeDtypeStruct((Bp, Dp), out_dtype),
            grid_spec=pltpu.PrefetchScalarGridSpec(
                num_scalar_prefetch=0,
                grid=(Dp // tn_sel, Bp // tb_sel),   # column slabs outer
                in_specs=in_specs,
                out_specs=pl.BlockSpec((tb_sel, tn_sel), lambda j, i: (i, j)),
            ),
            compiler_params=pltpu.CompilerParams(
                # Columns "parallel", batch "arbitrary": on v7x the two TCs
                # split column slabs, so the DxD weight is streamed once total.
                dimension_semantics=("parallel", "arbitrary"),
                vmem_limit_bytes=int(budget),
            ),
            cost_estimate=cost,
        )(*args)

    if (Bp, Dp) != (B, D):
        out = out[:B, :D]
    return out


def gating_context_ref(x, gating_weights, gating_biases, *, mm_dtype=None):
    """Plain-JAX reference for correctness checking."""
    xm = x if mm_dtype is None else x.astype(mm_dtype)
    wm = gating_weights if mm_dtype is None else gating_weights.astype(mm_dtype)
    gates = jnp.dot(xm, wm, preferred_element_type=jnp.float32)
    gates = jax.nn.sigmoid(gates + gating_biases.astype(jnp.float32))
    return (x.astype(jnp.float32) * gates).astype(x.dtype)


if __name__ == "__main__":
    key = jax.random.PRNGKey(0)
    kx, kw, kb, kx2 = jax.random.split(key, 4)

    # --- small shape consistent with the module (resident-W fast path) ------
    B, D = 8, 128
    x = jax.random.normal(kx, (B, D), dtype=jnp.float32)
    gating_weights = jax.random.normal(kw, (D, D), dtype=jnp.float32) / math.sqrt(D)
    gating_biases = jax.random.normal(kb, (D,), dtype=jnp.float32) / math.sqrt(D)

    out = jax.block_until_ready(gating_context(x, gating_weights, gating_biases))
    ref = gating_context_ref(x, gating_weights, gating_biases)
    assert out.shape == (B, D)
    assert jnp.allclose(out, ref, atol=2e-5, rtol=2e-5)

    # --- ragged batch, forced column-slab path (multi-slab in-kernel slice) --
    B2, D2 = 300, 384
    x2 = jax.random.normal(kx2, (B2, D2), dtype=jnp.float32)
    w2 = jax.random.normal(kw, (D2, D2), dtype=jnp.float32) / math.sqrt(D2)
    b2 = jax.random.normal(kb, (D2,), dtype=jnp.float32) / math.sqrt(D2)

    out2 = jax.block_until_ready(
        gating_context(x2, w2, b2, resident_w=False, tn=128))
    ref2 = gating_context_ref(x2, w2, b2)
    assert out2.shape == (B2, D2)
    assert jnp.allclose(out2, ref2, atol=2e-5, rtol=2e-5)

    # --- bf16-weight path on the slab path (pre-cast x + separate gate slice)
    out3 = jax.block_until_ready(
        gating_context(x2, w2, b2, weights_in_bf16=True, resident_w=False, tn=128))
    ref3 = gating_context_ref(x2, w2, b2, mm_dtype=jnp.bfloat16)
    assert jnp.allclose(out3, ref3, atol=1e-2, rtol=1e-2)

    # --- bf16-weight path on the resident-W fast path ------------------------
    out4 = jax.block_until_ready(
        gating_context(x2, w2, b2, weights_in_bf16=True))
    assert jnp.allclose(out4, ref3, atol=1e-2, rtol=1e-2)

    print("KERNEL_OK")
</pallas_src>

<mosaic_0001>
module attributes {stable_mosaic.version = 11 : i64} {
  func.func @_gating_kernel_resident(%arg0: i32, %arg1: memref<8x128xf32, #tpu.memory_space<vmem>>, %arg2: memref<128x128xf32, #tpu.memory_space<vmem>>, %arg3: memref<1x128xf32, #tpu.memory_space<vmem>>, %arg4: memref<8x128xf32, #tpu.memory_space<vmem>>) attributes {dimension_semantics = [#tpu.dimension_semantics<parallel>], iteration_bounds = array<i64: 1>, scalar_prefetch = 0 : i64, scratch_operands = 0 : i64, tpu.core_type = #tpu.core_type<tc>, window_params = [{transform_indices = @transform_0, window_bounds = array<i64: 8, 128>}, {pipeline_mode = #tpu.pipeline_mode<synchronous>, transform_indices = @transform_1, window_bounds = array<i64: 128, 128>}, {pipeline_mode = #tpu.pipeline_mode<synchronous>, transform_indices = @transform_2, window_bounds = array<i64: 1, 128>}, {transform_indices = @transform_3, window_bounds = array<i64: 8, 128>}]} {
    %c0 = arith.constant 0 : index
    %c0_0 = arith.constant 0 : index
    %0 = vector.load %arg1[%c0, %c0_0] : memref<8x128xf32, #tpu.memory_space<vmem>>, vector<8x128xf32>
    %c0_1 = arith.constant 0 : index
    %c0_2 = arith.constant 0 : index
    %1 = vector.load %arg2[%c0_1, %c0_2] : memref<128x128xf32, #tpu.memory_space<vmem>>, vector<128x128xf32>
    %cst = arith.constant dense<0.000000e+00> : vector<8x128xf32>
    %2 = tpu.matmul %0, %1, %cst {dimension_numbers = #tpu.dot_dimension_numbers<[1], [0], [0], [1], [0, 0, 1, 1], [], []>} : vector<8x128xf32>, vector<128x128xf32>, vector<8x128xf32> -> vector<8x128xf32>
    %c0_3 = arith.constant 0 : index
    %c0_4 = arith.constant 0 : index
    %3 = vector.load %arg3[%c0_3, %c0_4] : memref<1x128xf32, #tpu.memory_space<vmem>>, vector<1x128xf32>
    %4 = vector.broadcast %3 : vector<1x128xf32> to vector<8x128xf32>
    %5 = arith.addf %2, %4 : vector<8x128xf32>
    %6 = arith.negf %5 : vector<8x128xf32>
    %7 = math.exp %6 : vector<8x128xf32>
    %cst_5 = arith.constant 1.000000e+00 : f32
    %8 = vector.broadcast %cst_5 : f32 to vector<8x128xf32>
    %9 = arith.addf %8, %7 : vector<8x128xf32>
    %10 = arith.divf %8, %9 : vector<8x128xf32>
    %11 = arith.mulf %0, %10 : vector<8x128xf32>
    %c0_6 = arith.constant 0 : index
    %c0_7 = arith.constant 0 : index
    %12 = vector.load %arg4[%c0_6, %c0_7] : memref<8x128xf32, #tpu.memory_space<vmem>>, vector<8x128xf32>
    tpu.vector_store %arg4[%c0_6, %c0_7], %11 {strides = array<i32>} : memref<8x128xf32, #tpu.memory_space<vmem>>, vector<8x128xf32>,
    return
  }
  func.func @transform_0(%arg0: i32) -> (i32, i32) {
    %c0_i32 = arith.constant 0 : i32
    %c0_i32_0 = arith.constant 0 : i32
    return %arg0, %c0_i32 : i32, i32
  }
  func.func @transform_1(%arg0: i32) -> (i32, i32) {
    %c0_i32 = arith.constant 0 : i32
    %c0_i32_0 = arith.constant 0 : i32
    %c0_i32_1 = arith.constant 0 : i32
    return %c0_i32, %c0_i32_0 : i32, i32
  }
  func.func @transform_2(%arg0: i32) -> (i32, i32) {
    %c0_i32 = arith.constant 0 : i32
    %c0_i32_0 = arith.constant 0 : i32
    %c0_i32_1 = arith.constant 0 : i32
    return %c0_i32, %c0_i32_0 : i32, i32
  }
  func.func @transform_3(%arg0: i32) -> (i32, i32) {
    %c0_i32 = arith.constant 0 : i32
    %c0_i32_0 = arith.constant 0 : i32
    return %arg0, %c0_i32 : i32, i32
  }
}

</mosaic_0001>

<bundles_post_ra>
// kernel: tpu_custom_call.1
= control target key start
LH: loop header
LB: loop body
LE: loop exit
PB: predicated region body
PF: predicated region fallthrough
CT: control target
= control target key end

     0   :  { %8 = vsyncpa [#allocation3], 0  ;;  %s251_s0 = inlined_call_operand.hbm [shape: f32[8,128], index: 0, kind: input, shape index: {}]   ;;  %s252_s1 = inlined_call_operand.hbm [shape: f32[128,128], index: 1, kind: input, shape index: {}]   ;;  %s253_s2 = inlined_call_operand.vmem [shape: f32[1,128], index: 2, kind: input, shape index: {}]   ;;  %s254_s3 = inlined_call_operand.hbm [shape: f32[8,128], index: 3, kind: output, shape index: {}]  }
   0x1   :  { %9 = vsyncpa [#allocation6], 0 }
   0x2   :  { %10 = vsyncpa [#allocation4], 0  ;;  %s16_s14 = sshll.u32 %s251_s0, 4  ;;  %s214_s15 = smov [#allocation2]   ;;  %s17_s14 = int_to_ptr.hbm [resolvable:$true] %s16_s14 }
   0x3   :  { %s18_s16 = sshll.u32 %s214_s15, 4  ;;  %s26_s19 = sshll.u32 %s252_s1, 4  ;;  %s19_s16 = int_to_ptr.vmem [resolvable:$true] %s18_s16  ;;  %s27_s19 = int_to_ptr.hbm [resolvable:$true] %s26_s19 }
   0x4   :  { %21 = dma.hbm_to_vmem [thread:$0]  %s17_s14, 128, %s19_s16, [#allocation3]  }
   0x5   :  { %s215_s20 = smov [#allocation5]   ;;  %s216_s22 = smov 128  }
   0x6   :  { %s28_s21 = sshll.u32 %s215_s20, 4  ;;  %s217_s23 = smov 8   ;;  %s29_s21 = int_to_ptr.vmem [resolvable:$true] %s28_s21 }
   0x7   :  { %34 = dma.hbm_to_vmem [thread:$0]  %s27_s19, 2048, %s29_s21, [#allocation6], %s216_s22, %s216_s22, %s217_s23  }
   0x8   :  { %208 = dma.done.wait [#allocation3], 128  }
   0x9   :  { %209 = vsyncadd [#allocation3], 4294967168 }
   0xa   :  { %210 = dma.done.wait [#allocation6], 2048  }
   0xb   :  { %211 = vsyncadd [#allocation6], 4294965248  ;;  %v61_v0 = vld [vmem:[#allocation5 + $0x78] sm:$0xff]  ;;  %v60_v1 = vld [vmem:[#allocation5 + $0x70] sm:$0xff]  ;;  %s218_s24 = smov [#allocation7]   ;;  %s114_s27 = sshll.u32 %s254_s3, 4  ;;  %s115_s27 = int_to_ptr.hbm [resolvable:$true] %s114_s27 }
   0xc   :  { %66 = vmatpush.msra.mxu0 %v61_v0  ;;  %v59_v2 = vld [vmem:[#allocation5 + $0x68] sm:$0xff]  ;;  %v58_v3 = vld [vmem:[#allocation5 + $0x60] sm:$0xff]  ;;  %v57_v4 = vld [vmem:[#allocation5 + $0x58] sm:$0xff] }
   0xd   :  { %v56_v5 = vld [vmem:[#allocation5 + $0x50] sm:$0xff]  ;;  %v55_v6 = vld [vmem:[#allocation5 + $0x48] sm:$0xff]  ;;  %v54_v7 = vld [vmem:[#allocation5 + $0x40] sm:$0xff] }
   0xe   :  { %67 = vmatpush.msra.mxu0 %v60_v1  ;;  %v53_v8 = vld [vmem:[#allocation5 + $0x38] sm:$0xff]  ;;  %v52_v9 = vld [vmem:[#allocation5 + $0x30] sm:$0xff]  ;;  %v51_v10 = vld [vmem:[#allocation5 + $0x28] sm:$0xff] }
   0xf   :  { %v50_v11 = vld [vmem:[#allocation5 + $0x20] sm:$0xff]  ;;  %v49_v12 = vld [vmem:[#allocation5 + $0x18] sm:$0xff]  ;;  %v48_v13 = vld [vmem:[#allocation5 + $0x10] sm:$0xff] }
  0x10   :  { %68 = vmatpush.msra.mxu0 %v59_v2  ;;  %v47_v14 = vld [vmem:[#allocation5 + $0x8] sm:$0xff]  ;;  %v46_v15 = vld [vmem:[#allocation5] sm:$0xff]  ;;  %v45_v16 = vld [vmem:[#allocation2] sm:$0xff] }
  0x11   :  { %v131_v17 = vld [vmem:[%s253_s2] ss:$0 sm:$0xff]  ;;  %s112_s2 = sshll.u32 %s218_s24, 4  ;;  %s113_s2 = int_to_ptr.vmem [resolvable:$true] %s112_s2 }
  0x12   :  { %69 = vmatpush.msra.mxu0 %v58_v3 }
  0x14   :  { %70 = vmatpush.msra.mxu0 %v57_v4 }
  0x16   :  { %71 = vmatpush.msra.mxu0 %v56_v5 }
  0x18   :  { %72 = vmatpush.msra.mxu0 %v55_v6 }
  0x1a   :  { %73 = vmatpush.msra.mxu0 %v54_v7 }
  0x1c   :  { %74 = vmatpush.msra.mxu0 %v53_v8 }
  0x1e   :  { %75 = vmatpush.msra.mxu0 %v52_v9 }
  0x20   :  { %76 = vmatpush.msra.mxu0 %v51_v10 }
  0x22   :  { %77 = vmatpush.msra.mxu0 %v50_v11 }
  0x24   :  { %78 = vmatpush.msra.mxu0 %v49_v12 }
  0x26   :  { %79 = vmatpush.msra.mxu0 %v48_v13 }
  0x28   :  { %80 = vmatpush.msra.mxu0 %v47_v14 }
  0x2a   :  { %81 = vmatpush.msra.mxu0 %v46_v15 }
  0x2b   :  { %82 = vmatmul.f32.vlgmr.msra.gmra.mxu0 %v45_v16 }
  0xa8   :  { %v83_v18 = vpop.f32.mrf.mxu0 }
  0xa9   :  { %v84_v19 = vadd.f32 %v131_v17, %v83_v18 }
  0xab   :  { %v125_v20 = vmul.f32 -1.442695, %v84_v19 }
  0xad   :  { %132 = vpow2.f32 %v125_v20 }
  0xb3   :  { %v133_v21 = vpop.eup %132 }
  0xb4   :  { %v89_v22 = vadd.f32 1.0, %v133_v21 }
  0xb6   :  { %134 = vrcp.f32 %v89_v22  ;;  %v101_v26 = vand.u32 2147483648, %v89_v22  ;;  %v99_v28 = vand.u32 2147483647, %v89_v22  ;;  %vm95_vm1 = vweird.f32 %v89_v22 }
  0xb8   :  { %v102_v30 = vor.u32 1.1754944e-38, %v101_v26  ;;  %vm100_vm3 = vcmp.eq.f32.partialorder %v99_v28, 8.507059e+37 }
  0xbc   :  { %v135_v23 = vpop.eup %134 }
  0xbd   :  { %v91_v24 = vmul.f32 %v135_v23, %v89_v22  ;;  %vm96_vm0 = vweird.f32 %v135_v23 }
  0xbe   :  { %vm97_vm2 = vmor %vm95_vm1, %vm96_vm0 }
  0xbf   :  { %v92_v25 = vsub.f32 1.0, %v91_v24 }
  0xc1   :  { %v93_v27 = vmul.f32 %v135_v23, %v92_v25 }
  0xc3   :  { %v94_v29 = vadd.f32 %v135_v23, %v93_v27 }
  0xc5   :  { %v98_v31 = vsel %vm97_vm2, %v135_v23, %v94_v29 }
  0xc6   :  { %v103_v32 = vsel %vm100_vm3, %v102_v30, %v98_v31 }
  0xc7   :  { %v105_v33 = vmul.f32 %v103_v32, %v45_v16 }
  0xc9   :  { %106 = vst [vmem:[#allocation7] sm:$0xff] %v105_v33 }
  0xca   :  { %117 = dma.vmem_to_hbm [thread:$0]  %s113_s2, 128, %s115_s27, [#allocation4]  }
  0xcb   :  { %212 = dma.done.wait [#allocation4], 128  }
  0xcc   :  { %213 = vsyncadd [#allocation4], 4294967168 }
  0xcd   :  { %122 = vsyncpa [#allocation3], 1 }
  0xce   :  { %123 = vsyncpa [#allocation6], 1 }
  0xcf   :  { %124 = vsyncpa [#allocation4], 1 }

</bundles_post_ra>
